<compile_context>
chip_gen: v6e
topology: v6e:2x2x1
jax: 0.10.0
libtpu: 0.0.40
codegen_flags: <defaults>
</compile_context>

<pallas_src>
import jax
import jax.numpy as jnp
import numpy as np
from jax.experimental import pallas as pl
from jax.experimental.pallas import tpu as pltpu

_C1 = 0.01 ** 2
_C2 = 0.03 ** 2


def _ssim_kernel(xp_ref, yp_ref, out_ref):
    """One (batch*channel) plane per grid step.

    xp_ref, yp_ref : VMEM (1, H+2, W+2) reflection-padded inputs (f32)
    out_ref        : VMEM (1, H, W)     SSIM loss map
    """
    _, H, W = out_ref.shape

    xp = xp_ref[0]          # (H+2, W+2)
    yp = yp_ref[0]

    def pool3(a):
        # Separable 3x3 box mean over the padded plane -> (H, W).
        v = a[0:H, :] + a[1:H + 1, :] + a[2:H + 2, :]          # vertical   (H, W+2)
        s = v[:, 0:W] + v[:, 1:W + 1] + v[:, 2:W + 2]          # horizontal (H, W)
        return s * jnp.float32(1.0 / 9.0)

    mu_x = pool3(xp)
    mu_y = pool3(yp)
    sigma_x = pool3(xp * xp) - mu_x * mu_x
    sigma_y = pool3(yp * yp) - mu_y * mu_y
    sigma_xy = pool3(xp * yp) - mu_x * mu_y

    ssim_n = (2.0 * mu_x * mu_y + _C1) * (2.0 * sigma_xy + _C2)
    ssim_d = (mu_x * mu_x + mu_y * mu_y + _C1) * (sigma_x + sigma_y + _C2)
    out = jnp.clip((1.0 - ssim_n / ssim_d) * 0.5, 0.0, 1.0)
    out_ref[0] = out.astype(out_ref.dtype)


def ssim(x, y):
    """Pallas TPU implementation of monodepth2 SSIM.forward.

    x, y : (B, C, H, W) float arrays.  Returns the (B, C, H, W) SSIM loss map (float32).
    """
    B, C, H, W = x.shape
    Hp, Wp = H + 2, W + 2

    xf = x.astype(jnp.float32)
    yf = y.astype(jnp.float32)
    pad = ((0, 0), (0, 0), (1, 1), (1, 1))
    # ReflectionPad2d(1), fused by XLA outside the kernel.
    xpad = jnp.pad(xf, pad, mode="reflect").reshape(B * C, Hp, Wp)
    ypad = jnp.pad(yf, pad, mode="reflect").reshape(B * C, Hp, Wp)

    out = pl.pallas_call(
        _ssim_kernel,
        out_shape=jax.ShapeDtypeStruct((B * C, H, W), jnp.float32),
        grid_spec=pltpu.PrefetchScalarGridSpec(
            num_scalar_prefetch=0,
            grid=(B * C,),
            in_specs=[
                pl.BlockSpec((1, Hp, Wp), lambda i: (i, 0, 0)),   # padded x plane
                pl.BlockSpec((1, Hp, Wp), lambda i: (i, 0, 0)),   # padded y plane
            ],
            out_specs=pl.BlockSpec((1, H, W), lambda i: (i, 0, 0)),
        ),
        compiler_params=pltpu.CompilerParams(
            dimension_semantics=("parallel",)),   # disjoint outputs -> megacore-shardable
    )(xpad, ypad)

    # TODO(synk): for multi-megapixel planes, additionally tile H with a 2-row halo
    # (pl.Element row index map) instead of one whole-plane block per grid step.
    return out.reshape(B, C, H, W)


def _ssim_reference(x, y):
    """Pure-JAX reference of the PyTorch SSIM.forward (for verification)."""
    pad = ((0, 0), (0, 0), (1, 1), (1, 1))
    xp = jnp.pad(x, pad, mode="reflect")
    yp = jnp.pad(y, pad, mode="reflect")

    def pool(a):
        s = jax.lax.reduce_window(a, 0.0, jax.lax.add,
                                  (1, 1, 3, 3), (1, 1, 1, 1), "VALID")
        return s / 9.0

    mu_x, mu_y = pool(xp), pool(yp)
    sigma_x = pool(xp * xp) - mu_x ** 2
    sigma_y = pool(yp * yp) - mu_y ** 2
    sigma_xy = pool(xp * yp) - mu_x * mu_y
    n = (2 * mu_x * mu_y + _C1) * (2 * sigma_xy + _C2)
    d = (mu_x ** 2 + mu_y ** 2 + _C1) * (sigma_x + sigma_y + _C2)
    return jnp.clip((1 - n / d) / 2, 0.0, 1.0)


if __name__ == "__main__":
    B, C, H, W = 2, 3, 16, 16
    key = jax.random.PRNGKey(0)
    kx, ky = jax.random.split(key)

    x = jax.random.uniform(kx, (B, C, H, W), jnp.float32)
    y = jnp.clip(x + 0.1 * jax.random.normal(ky, (B, C, H, W), jnp.float32), 0.0, 1.0)

    out = ssim(x, y)
    out = jax.block_until_ready(out)

    ref = _ssim_reference(x, y)
    np.testing.assert_allclose(np.asarray(out), np.asarray(ref), rtol=1e-5, atol=1e-5)

    print("KERNEL_OK")
</pallas_src>

<mosaic_0001>
module attributes {stable_mosaic.version = 11 : i64} {
  func.func @_ssim_kernel(%arg0: i32, %arg1: memref<1x18x18xf32, #tpu.memory_space<vmem>>, %arg2: memref<1x18x18xf32, #tpu.memory_space<vmem>>, %arg3: memref<1x16x16xf32, #tpu.memory_space<vmem>>) attributes {dimension_semantics = [#tpu.dimension_semantics<parallel>], iteration_bounds = array<i64: 6>, scalar_prefetch = 0 : i64, scratch_operands = 0 : i64, tpu.core_type = #tpu.core_type<tc>, window_params = [{transform_indices = @transform_0, window_bounds = array<i64: 1, 18, 18>}, {transform_indices = @transform_1, window_bounds = array<i64: 1, 18, 18>}, {transform_indices = @transform_2, window_bounds = array<i64: 1, 16, 16>}]} {
    %c0 = arith.constant 0 : index
    %c0_0 = arith.constant 0 : index
    %c0_1 = arith.constant 0 : index
    %0 = vector.load %arg1[%c0, %c0_0, %c0_1] : memref<1x18x18xf32, #tpu.memory_space<vmem>>, vector<1x18x18xf32>
    %1 = vector.shape_cast %0 : vector<1x18x18xf32> to vector<18x18xf32>
    %c0_2 = arith.constant 0 : index
    %c0_3 = arith.constant 0 : index
    %c0_4 = arith.constant 0 : index
    %2 = vector.load %arg2[%c0_2, %c0_3, %c0_4] : memref<1x18x18xf32, #tpu.memory_space<vmem>>, vector<1x18x18xf32>
    %3 = vector.shape_cast %2 : vector<1x18x18xf32> to vector<18x18xf32>
    %4 = vector.extract_strided_slice %1 {offsets = [0, 0], sizes = [16, 18], strides = [1, 1]} : vector<18x18xf32> to vector<16x18xf32>
    %5 = vector.extract_strided_slice %1 {offsets = [1, 0], sizes = [16, 18], strides = [1, 1]} : vector<18x18xf32> to vector<16x18xf32>
    %6 = arith.addf %4, %5 : vector<16x18xf32>
    %7 = vector.extract_strided_slice %1 {offsets = [2, 0], sizes = [16, 18], strides = [1, 1]} : vector<18x18xf32> to vector<16x18xf32>
    %8 = arith.addf %6, %7 : vector<16x18xf32>
    %9 = vector.extract_strided_slice %8 {offsets = [0, 0], sizes = [16, 16], strides = [1, 1]} : vector<16x18xf32> to vector<16x16xf32>
    %10 = vector.extract_strided_slice %8 {offsets = [0, 1], sizes = [16, 16], strides = [1, 1]} : vector<16x18xf32> to vector<16x16xf32>
    %11 = arith.addf %9, %10 : vector<16x16xf32>
    %12 = vector.extract_strided_slice %8 {offsets = [0, 2], sizes = [16, 16], strides = [1, 1]} : vector<16x18xf32> to vector<16x16xf32>
    %13 = arith.addf %11, %12 : vector<16x16xf32>
    %cst = arith.constant 0.111111112 : f32
    %14 = vector.broadcast %cst : f32 to vector<16x16xf32>
    %15 = arith.mulf %13, %14 : vector<16x16xf32>
    %16 = vector.extract_strided_slice %3 {offsets = [0, 0], sizes = [16, 18], strides = [1, 1]} : vector<18x18xf32> to vector<16x18xf32>
    %17 = vector.extract_strided_slice %3 {offsets = [1, 0], sizes = [16, 18], strides = [1, 1]} : vector<18x18xf32> to vector<16x18xf32>
    %18 = arith.addf %16, %17 : vector<16x18xf32>
    %19 = vector.extract_strided_slice %3 {offsets = [2, 0], sizes = [16, 18], strides = [1, 1]} : vector<18x18xf32> to vector<16x18xf32>
    %20 = arith.addf %18, %19 : vector<16x18xf32>
    %21 = vector.extract_strided_slice %20 {offsets = [0, 0], sizes = [16, 16], strides = [1, 1]} : vector<16x18xf32> to vector<16x16xf32>
    %22 = vector.extract_strided_slice %20 {offsets = [0, 1], sizes = [16, 16], strides = [1, 1]} : vector<16x18xf32> to vector<16x16xf32>
    %23 = arith.addf %21, %22 : vector<16x16xf32>
    %24 = vector.extract_strided_slice %20 {offsets = [0, 2], sizes = [16, 16], strides = [1, 1]} : vector<16x18xf32> to vector<16x16xf32>
    %25 = arith.addf %23, %24 : vector<16x16xf32>
    %cst_5 = arith.constant 0.111111112 : f32
    %26 = vector.broadcast %cst_5 : f32 to vector<16x16xf32>
    %27 = arith.mulf %25, %26 : vector<16x16xf32>
    %28 = arith.mulf %1, %1 : vector<18x18xf32>
    %29 = vector.extract_strided_slice %28 {offsets = [0, 0], sizes = [16, 18], strides = [1, 1]} : vector<18x18xf32> to vector<16x18xf32>
    %30 = vector.extract_strided_slice %28 {offsets = [1, 0], sizes = [16, 18], strides = [1, 1]} : vector<18x18xf32> to vector<16x18xf32>
    %31 = arith.addf %29, %30 : vector<16x18xf32>
    %32 = vector.extract_strided_slice %28 {offsets = [2, 0], sizes = [16, 18], strides = [1, 1]} : vector<18x18xf32> to vector<16x18xf32>
    %33 = arith.addf %31, %32 : vector<16x18xf32>
    %34 = vector.extract_strided_slice %33 {offsets = [0, 0], sizes = [16, 16], strides = [1, 1]} : vector<16x18xf32> to vector<16x16xf32>
    %35 = vector.extract_strided_slice %33 {offsets = [0, 1], sizes = [16, 16], strides = [1, 1]} : vector<16x18xf32> to vector<16x16xf32>
    %36 = arith.addf %34, %35 : vector<16x16xf32>
    %37 = vector.extract_strided_slice %33 {offsets = [0, 2], sizes = [16, 16], strides = [1, 1]} : vector<16x18xf32> to vector<16x16xf32>
    %38 = arith.addf %36, %37 : vector<16x16xf32>
    %cst_6 = arith.constant 0.111111112 : f32
    %39 = vector.broadcast %cst_6 : f32 to vector<16x16xf32>
    %40 = arith.mulf %38, %39 : vector<16x16xf32>
    %41 = arith.mulf %15, %15 : vector<16x16xf32>
    %42 = arith.subf %40, %41 : vector<16x16xf32>
    %43 = arith.mulf %3, %3 : vector<18x18xf32>
    %44 = vector.extract_strided_slice %43 {offsets = [0, 0], sizes = [16, 18], strides = [1, 1]} : vector<18x18xf32> to vector<16x18xf32>
    %45 = vector.extract_strided_slice %43 {offsets = [1, 0], sizes = [16, 18], strides = [1, 1]} : vector<18x18xf32> to vector<16x18xf32>
    %46 = arith.addf %44, %45 : vector<16x18xf32>
    %47 = vector.extract_strided_slice %43 {offsets = [2, 0], sizes = [16, 18], strides = [1, 1]} : vector<18x18xf32> to vector<16x18xf32>
    %48 = arith.addf %46, %47 : vector<16x18xf32>
    %49 = vector.extract_strided_slice %48 {offsets = [0, 0], sizes = [16, 16], strides = [1, 1]} : vector<16x18xf32> to vector<16x16xf32>
    %50 = vector.extract_strided_slice %48 {offsets = [0, 1], sizes = [16, 16], strides = [1, 1]} : vector<16x18xf32> to vector<16x16xf32>
    %51 = arith.addf %49, %50 : vector<16x16xf32>
    %52 = vector.extract_strided_slice %48 {offsets = [0, 2], sizes = [16, 16], strides = [1, 1]} : vector<16x18xf32> to vector<16x16xf32>
    %53 = arith.addf %51, %52 : vector<16x16xf32>
    %cst_7 = arith.constant 0.111111112 : f32
    %54 = vector.broadcast %cst_7 : f32 to vector<16x16xf32>
    %55 = arith.mulf %53, %54 : vector<16x16xf32>
    %56 = arith.mulf %27, %27 : vector<16x16xf32>
    %57 = arith.subf %55, %56 : vector<16x16xf32>
    %58 = arith.mulf %1, %3 : vector<18x18xf32>
    %59 = vector.extract_strided_slice %58 {offsets = [0, 0], sizes = [16, 18], strides = [1, 1]} : vector<18x18xf32> to vector<16x18xf32>
    %60 = vector.extract_strided_slice %58 {offsets = [1, 0], sizes = [16, 18], strides = [1, 1]} : vector<18x18xf32> to vector<16x18xf32>
    %61 = arith.addf %59, %60 : vector<16x18xf32>
    %62 = vector.extract_strided_slice %58 {offsets = [2, 0], sizes = [16, 18], strides = [1, 1]} : vector<18x18xf32> to vector<16x18xf32>
    %63 = arith.addf %61, %62 : vector<16x18xf32>
    %64 = vector.extract_strided_slice %63 {offsets = [0, 0], sizes = [16, 16], strides = [1, 1]} : vector<16x18xf32> to vector<16x16xf32>
    %65 = vector.extract_strided_slice %63 {offsets = [0, 1], sizes = [16, 16], strides = [1, 1]} : vector<16x18xf32> to vector<16x16xf32>
    %66 = arith.addf %64, %65 : vector<16x16xf32>
    %67 = vector.extract_strided_slice %63 {offsets = [0, 2], sizes = [16, 16], strides = [1, 1]} : vector<16x18xf32> to vector<16x16xf32>
    %68 = arith.addf %66, %67 : vector<16x16xf32>
    %cst_8 = arith.constant 0.111111112 : f32
    %69 = vector.broadcast %cst_8 : f32 to vector<16x16xf32>
    %70 = arith.mulf %68, %69 : vector<16x16xf32>
    %71 = arith.mulf %15, %27 : vector<16x16xf32>
    %72 = arith.subf %70, %71 : vector<16x16xf32>
    %cst_9 = arith.constant 2.000000e+00 : f32
    %73 = vector.broadcast %cst_9 : f32 to vector<16x16xf32>
    %74 = arith.mulf %73, %15 : vector<16x16xf32>
    %75 = arith.mulf %74, %27 : vector<16x16xf32>
    %cst_10 = arith.constant 9.99999974E-5 : f32
    %76 = vector.broadcast %cst_10 : f32 to vector<16x16xf32>
    %77 = arith.addf %75, %76 : vector<16x16xf32>
    %cst_11 = arith.constant 2.000000e+00 : f32
    %78 = vector.broadcast %cst_11 : f32 to vector<16x16xf32>
    %79 = arith.mulf %78, %72 : vector<16x16xf32>
    %cst_12 = arith.constant 8.99999984E-4 : f32
    %80 = vector.broadcast %cst_12 : f32 to vector<16x16xf32>
    %81 = arith.addf %79, %80 : vector<16x16xf32>
    %82 = arith.mulf %77, %81 : vector<16x16xf32>
    %83 = arith.mulf %15, %15 : vector<16x16xf32>
    %84 = arith.mulf %27, %27 : vector<16x16xf32>
    %85 = arith.addf %83, %84 : vector<16x16xf32>
    %cst_13 = arith.constant 9.99999974E-5 : f32
    %86 = vector.broadcast %cst_13 : f32 to vector<16x16xf32>
    %87 = arith.addf %85, %86 : vector<16x16xf32>
    %88 = arith.addf %42, %57 : vector<16x16xf32>
    %cst_14 = arith.constant 8.99999984E-4 : f32
    %89 = vector.broadcast %cst_14 : f32 to vector<16x16xf32>
    %90 = arith.addf %88, %89 : vector<16x16xf32>
    %91 = arith.mulf %87, %90 : vector<16x16xf32>
    %92 = arith.divf %82, %91 : vector<16x16xf32>
    %cst_15 = arith.constant 1.000000e+00 : f32
    %93 = vector.broadcast %cst_15 : f32 to vector<16x16xf32>
    %94 = arith.subf %93, %92 : vector<16x16xf32>
    %cst_16 = arith.constant 5.000000e-01 : f32
    %95 = vector.broadcast %cst_16 : f32 to vector<16x16xf32>
    %96 = arith.mulf %94, %95 : vector<16x16xf32>
    %cst_17 = arith.constant 0.000000e+00 : f32
    %cst_18 = arith.constant 1.000000e+00 : f32
    %97 = vector.broadcast %cst_17 : f32 to vector<16x16xf32>
    %98 = arith.maximumf %97, %96 : vector<16x16xf32>
    %99 = vector.broadcast %cst_18 : f32 to vector<16x16xf32>
    %100 = arith.minimumf %99, %98 : vector<16x16xf32>
    %c0_19 = arith.constant 0 : index
    %c0_20 = arith.constant 0 : index
    %c0_21 = arith.constant 0 : index
    %101 = vector.load %arg3[%c0_19, %c0_20, %c0_21] : memref<1x16x16xf32, #tpu.memory_space<vmem>>, vector<1x16x16xf32>
    %102 = vector.shape_cast %101 : vector<1x16x16xf32> to vector<16x16xf32>
    %103 = vector.shape_cast %100 : vector<16x16xf32> to vector<1x16x16xf32>
    tpu.vector_store %arg3[%c0_19, %c0_20, %c0_21], %103 {strides = array<i32>} : memref<1x16x16xf32, #tpu.memory_space<vmem>>, vector<1x16x16xf32>,
    return
  }
  func.func @transform_0(%arg0: i32) -> (i32, i32, i32) {
    %c0_i32 = arith.constant 0 : i32
    %c0_i32_0 = arith.constant 0 : i32
    %c0_i32_1 = arith.constant 0 : i32
    return %arg0, %c0_i32, %c0_i32_0 : i32, i32, i32
  }
  func.func @transform_1(%arg0: i32) -> (i32, i32, i32) {
    %c0_i32 = arith.constant 0 : i32
    %c0_i32_0 = arith.constant 0 : i32
    %c0_i32_1 = arith.constant 0 : i32
    return %arg0, %c0_i32, %c0_i32_0 : i32, i32, i32
  }
  func.func @transform_2(%arg0: i32) -> (i32, i32, i32) {
    %c0_i32 = arith.constant 0 : i32
    %c0_i32_0 = arith.constant 0 : i32
    %c0_i32_1 = arith.constant 0 : i32
    return %arg0, %c0_i32, %c0_i32_0 : i32, i32, i32
  }
}

</mosaic_0001>

<bundles_post_ra>
// kernel: tpu_custom_call.1
= control target key start
LH: loop header
LB: loop body
LE: loop exit
PB: predicated region body
PF: predicated region fallthrough
CT: control target
= control target key end

     0   :  { %7 = vsyncpa [#allocation3], 0  ;;  %s1122_s0 = inlined_call_operand.hbm [shape: f32[6,18,18], index: 0, kind: input, shape index: {}]   ;;  %s1123_s1 = inlined_call_operand.hbm [shape: f32[6,18,18], index: 1, kind: input, shape index: {}]   ;;  %s1124_s2 = inlined_call_operand.hbm [shape: f32[6,16,16], index: 2, kind: output, shape index: {}]  }
   0x1   :  { %9 = vsyncpa [#allocation3 + $0x1], 0 }
   0x2   :  { %10 = vsyncpa [#allocation6], 0 }
   0x3   :  { %12 = vsyncpa [#allocation6 + $0x1], 0 }
   0x4   :  { %13 = vsyncpa [#allocation4], 0 }
   0x5   :  { %15 = vsyncpa [#allocation4 + $0x1], 0  ;;  %s812_s9 = smov 0   ;;  %s814_s10 = smov 0  }
   0x6   :  { %s816_s11 = smov 0   ;;  %s818_s12 = smov 0  }
   0x7 LB: > { %s833_s13 = sadd.s32 4294967295, %s786_s12   ;;  %s583_s14 = sadd.s32 4294967294, %s786_s12   ;;  %s786_s12 = sphi %s818_s12, %s1138_s12   ;;  %s782_s11 = sphi %s816_s11, %s1137_s11   ;;  %s778_s10 = sphi %s814_s10, %s1136_s10   ;;  %s774_s9 = sphi %s812_s9, %s1135_s9  }
   0x8   : > { %s837_s15 = sadd.s32 1, %s786_s12   ;;  %s28_s16 = sadd.s32 1, %s782_s11 }
   0x9   : > { %s25_s17 = ssub.s32 %s786_s12, %s837_s15  ;;  %p35_p0 = scmp.ne.s32.totalorder %s782_s11, %s778_s10 }
   0xa   : > { %p26_p1 = scmp.eq.s32.totalorder %s25_s17, 0  ;;  %p36_p2 = scmp.eq.s32.totalorder %s786_s12, 0 }
   0xb   : > { %p41_p3 = scmp.ne.s32.totalorder %s778_s10, %s774_s9  ;;  %p42_p4 = scmp.eq.s32.totalorder %s833_s13, 0 }
   0xc   : > { %s849_s18 = scalar_select %p26_p1, %s782_s11, %s28_s16  }
   0xd   : > { %p37_p5 = por %p36_p2, %p35_p0  ;;  %p851_p6 = por %p42_p4, %p41_p3 }
   0xe   : > { %p91_p7 = scmp.eq.s32.totalorder %s833_s13, 5  ;;  %p97_p8 = scmp.eq.s32.totalorder %s583_s14, 5 }
   0xf   : > { %s1127_s19 = scalar_select %p851_p6, 1, 0 }
  0x10   : > { %p618_p9 = scmp.lt.s32.totalorder %s786_s12, 6  ;;  %p857_p10 = por %p91_p7, %p35_p0 }
  0x11   : > { %p861_p11 = por %p97_p8, %p41_p3  ;;  %s866_s22 = sand.u32 1, %s782_s11  }
  0x12   : > { %s1128_s20 = scalar_select %p857_p10, 1, 0 }
  0x13   : > { %s1129_s21 = scalar_select %p861_p11, 1, 0 }
  0x14   : > { %s597_s23 = smul.u32 384, %s786_s12  ;;  %p877_p12 = pnand %p618_p9, %p37_p5 }
  0x15   : > { %s596_s24 = smul.u32 24, %s866_s22  ;;  %s118_s3 = scalar_lea.sflag [#allocation3], %s866_s22 }
  0x16   : > { %s875_s27 = scalar_lea.hbm %s1122_s0, %s597_s23  ;;  %p664_p0 = pneg %p877_p12 }
  0x17   : > { %s121_s29 = scalar_lea.vmem [#allocation2], %s596_s24  ;;  %s662_s4 = scalar_lea.hbm %s875_s27, 384 }
  0x18   : > { %s128_s30 = sshll.u32 %s121_s29, 4  ;;  %p663_p13 = scmp.ne.s32.totalorder %s875_s27, %s662_s4  ;;  %s883_s30 = int_to_ptr.vmem [resolvable:$true] %s128_s30 }
  0x19   : > { %s667_s7 = scalar_lea.hbm %s1122_s0, 2304  ;;  %p668_p3 = scmp.lt.s32.totalorder %s875_s27, %s1122_s0 }
  0x1a   : > { %p665_p1 = pnand %p664_p0, %p663_p13  ;;  %p669_p4 = scmp.lt.s32.totalorder %s667_s7, %s662_s4 }
  0x1c   : > { %p666_p2 = pneg %p665_p1  ;;  %p670_p5 = por %p669_p4, %p668_p3 }
  0x1e   : > { %p671_p7 = pnand %p670_p5, %p666_p2 }
  0x20   : > { %674 = shalt.err (!%p671_p7)
}
  0x21   : > { %s675_s16 = scalar_lea.vmem %s883_s30, 384  ;;  %s788_s17 = smov [#allocation2]  }
  0x22   : > { %p676_p8 = scmp.ne.s32.totalorder %s883_s30, %s675_s16  ;;  %s680_s25 = sshll.u32 %s788_s17, 4  ;;  %s681_s25 = int_to_ptr.vmem [resolvable:$false] %s680_s25 }
  0x23   : > { %s682_s26 = scalar_lea.vmem %s681_s25, 768  ;;  %p683_p1 = scmp.lt.s32.totalorder %s883_s30, %s681_s25 }
  0x24   : > { %p678_p9 = pnand %p676_p8, %p664_p0  ;;  %p684_p11 = scmp.lt.s32.totalorder %s682_s26, %s675_s16 }
  0x26   : > { %p679_p13 = pneg %p678_p9  ;;  %p685_p10 = por %p684_p11, %p683_p1 }
  0x28   : > { %p686_p3 = pnand %p685_p10, %p679_p13 }
  0x2a   : > { %689 = shalt.err (!%p686_p3)
}
  0x2b   : > { %s789_s29 = smov 128   ;;  %s790_s4 = smov 8  }
  0x2c   : > { %610 = dma.hbm_to_vmem [thread:$0]  (!%p877_p12), %s875_s27, 384, %s883_s30, %s118_s3, %s789_s29, %s789_s29, %s790_s4  }
  0x2d   : > { %p588_p10 = scmp.ge.s32.totalorder %s786_s12, 1  ;;  %p157_p11 = scmp.lt.s32.totalorder %s786_s12, 7 }
  0x2e   : > { %s926_s8 = scalar_lea.hbm %s1123_s1, %s597_s23  ;;  %s142_s14 = scalar_lea.vmem [#allocation5], %s596_s24 }
  0x2f   : > { %p917_p2 = pnand %p588_p10, %p157_p11  ;;  %s149_s16 = sshll.u32 %s142_s14, 4  ;;  %s930_s16 = int_to_ptr.vmem [resolvable:$true] %s149_s16 }
  0x30   : > { %s139_s27 = scalar_lea.sflag [#allocation6], %s866_s22  ;;  %s690_s30 = scalar_lea.hbm %s926_s8, 384 }
  0x31   : > { %p691_p4 = scmp.ne.s32.totalorder %s926_s8, %s690_s30  ;;  %s695_s23 = scalar_lea.hbm %s1123_s1, 2304 }
  0x32   : > { %p696_p8 = scmp.lt.s32.totalorder %s926_s8, %s1123_s1  ;;  %p697_p9 = scmp.lt.s32.totalorder %s695_s23, %s690_s30 }
  0x33   : > { %p693_p5 = pnand %p691_p4, %p664_p0 }
  0x34   : > { %p698_p13 = por %p697_p9, %p696_p8 }
  0x35   : > { %p694_p7 = pneg %p693_p5 }
  0x37   : > { %p699_p1 = pnand %p698_p13, %p694_p7 }
  0x39   : > { %702 = shalt.err (!%p699_p1)
}
  0x3a   : > { %s703_s22 = scalar_lea.vmem %s930_s16, 384  ;;  %s791_s24 = smov [#allocation5]  }
  0x3b   : > { %p704_p3 = scmp.ne.s32.totalorder %s930_s16, %s703_s22  ;;  %s708_s6 = sshll.u32 %s791_s24, 4  ;;  %s709_s6 = int_to_ptr.vmem [resolvable:$false] %s708_s6 }
  0x3c   : > { %s710_s7 = scalar_lea.vmem %s709_s6, 768  ;;  %p711_p4 = scmp.lt.s32.totalorder %s930_s16, %s709_s6 }
  0x3d   : > { %p706_p10 = pnand %p704_p3, %p664_p0  ;;  %p712_p5 = scmp.lt.s32.totalorder %s710_s7, %s703_s22 }
  0x3f   : > { %p707_p11 = pneg %p706_p10  ;;  %p713_p6 = por %p712_p5, %p711_p4 }
  0x41   : > { %p714_p8 = pnand %p713_p6, %p707_p11 }
  0x43   : > { %717 = shalt.err (!%p714_p8)
}
  0x44   : > { %613 = dma.hbm_to_vmem [thread:$0]  (!%p877_p12), %s926_s8, 384, %s930_s16, %s139_s27, %s789_s29, %s789_s29, %s790_s4  }
  0x45   : > { %161 = sbr.rel (%p917_p2) target bundleno = 279 (0x117), region = 28  ;;  %s961_s14 = sand.u32 (!%p917_p2), 1, %s778_s10  }
  0x46   : > { %s600_s30 = smul.u32 (!%p917_p2), 24, %s961_s14  ;;  %s164_s3 = scalar_lea.sflag (!%p917_p2), [#allocation3], %s961_s14 }
  0x47   : > { %p1132_p6 = scmp.ne.s32.totalorder (!%p917_p2), %s1127_s19, 0 }
  0x48   : > { %s167_s17 = scalar_lea.vmem (!%p917_p2), [#allocation2], %s600_s30 }
  0x4a   : > { %761 = dma.done.wait (%p1132_p6), %s164_s3, 384  }
  0x4b   : > { %763 = vsyncadd (%p1132_p6), %s164_s3, 4294966912  ;;  %s173_s28 = scalar_lea.sflag [#allocation6], %s961_s14  ;;  %s176_s29 = scalar_lea.vmem [#allocation5], %s600_s30 }
  0x4c   : > { %765 = dma.done.wait (%p1132_p6), %s173_s28, 384  }
  0x4d   : > { %767 = vsyncadd (%p1132_p6), %s173_s28, 4294966912  ;;  %v974_v0 = vld [vmem:[%s176_s29] sm:$0xff]  ;;  %v976_v1 = vld [vmem:[%s176_s29 + $0x8] sm:$0xff]  ;;  %vm211_vm0 = vcmask 1046528   ;;  %vm221_vm1 = vcmask 1045504   ;;  %s792_s19 = smov 127  }
  0x4e   : > { %v978_v2 = vld [vmem:[%s167_s17] sm:$0xff]  ;;  %v254_v3 = vrot.slane %v974_v0, 1  ;;  %v255_v4 = vrot.slane %v976_v1, 1  ;;  %v263_v5 = vrot.slane %v974_v0, 2  ;;  %v264_v6 = vrot.slane %v976_v1, 2  ;;  %v984_v7 = vld [vmem:[%s167_s17 + $0x8] sm:$0xff] }
  0x4f   : > { %v212_v8 = vrot.slane %v978_v2, 1  ;;  %v213_v9 = vrot.slane %v984_v7, 1  ;;  %v222_v10 = vrot.slane %v978_v2, 2  ;;  %v223_v11 = vrot.slane %v984_v7, 2  ;;  %v990_v12 = vld [vmem:[%s176_s29 + $0x10] sm:$0x3] }
  0x50   : > { %v256_v13 = vsel %vm211_vm0, %v254_v3, %v255_v4  ;;  %v265_v14 = vsel %vm221_vm1, %v263_v5, %v264_v6  ;;  %v257_v15 = vrot.slane %v990_v12, 1  ;;  %v266_v16 = vrot.slane %v990_v12, 2  ;;  %v204_v17 = vld [vmem:[%s167_s17 + $0x10] sm:$0x3]  ;;  %s793_s4 = smov 126   ;;  %s589_s5 = sshll.u32 %s961_s14, 4 }
  0x51   : > { %v261_v18 = vadd.f32 %v256_v13, %v974_v0  ;;  %v214_v19 = vsel %vm211_vm0, %v212_v8, %v213_v9  ;;  %v224_v20 = vsel %vm221_vm1, %v222_v10, %v223_v11  ;;  %v215_v21 = vrot.slane %v204_v17, 1  ;;  %s595_s8 = sshll.u32 %s833_s13, 8  ;;  %s201_s16 = scalar_lea.vmem [#allocation7], %s589_s5 }
  0x52   : > { %v219_v22 = vadd.f32 %v214_v19, %v978_v2  ;;  %v258_v23 = vsel %vm211_vm0, %v255_v4, %v257_v15  ;;  %v267_v24 = vsel %vm221_vm1, %v264_v6, %v266_v16  ;;  %v225_v25 = vrot.slane %v204_v17, 2  ;;  %s487_s27 = sshll.u32 %s201_s16, 4  ;;  %s1078_s26 = scalar_lea.hbm %s1124_s2, %s595_s8  ;;  %s1080_s27 = int_to_ptr.vmem [resolvable:$true] %s487_s27 }
  0x53   : > { %v1002_v26 = vadd.f32 %v265_v14, %v261_v18  ;;  %v262_v27 = vadd.f32 %v258_v23, %v976_v1  ;;  %v216_v28 = vsel %vm211_vm0, %v213_v9, %v215_v21  ;;  %v293_v29 = vmul.f32 %v984_v7, %v984_v7  ;;  %s474_s13 = scalar_lea.sflag [#allocation4], %s961_s14  ;;  %s718_s22 = scalar_lea.vmem %s1080_s27, 256 }
  0x54   : > { %v1008_v30 = vadd.f32 %v224_v20, %v219_v22  ;;  %v220_v31 = vadd.f32 %v216_v28, %v984_v7  ;;  %v226_v32 = vsel %vm221_vm1, %v223_v11, %v225_v25  ;;  %v294_v33 = vmul.f32 %v204_v17, %v204_v17  ;;  %p719_p12 = scmp.ne.s32.totalorder %s1080_s27, %s718_s22  ;;  %p1133_p0 = scmp.ne.s32.totalorder %s1128_s20, 0 }
  0x55   : > { %274 = vrot.lane.b32.xlu1 %v1002_v26, %s792_s19  ;;  %v1014_v34 = vadd.f32 %v267_v24, %v262_v27  ;;  %v292_v35 = vmul.f32 %v978_v2, %v978_v2  ;;  %v299_v37 = vrot.slane %v293_v29, 1  ;;  %v341_v39 = vmul.f32 %v976_v1, %v976_v1  ;;  %s794_s24 = smov [#allocation7]  }
  0x56   : > { %233 = vrot.lane.b32.xlu0 %v1008_v30, %s792_s19  ;;  %v1020_v36 = vadd.f32 %v226_v32, %v220_v31  ;;  %v301_v38 = vrot.slane %v294_v33, 1  ;;  %v342_v41 = vmul.f32 %v990_v12, %v990_v12  ;;  %v340_v42 = vmul.f32 %v974_v0, %v974_v0  ;;  %p720_p2 = pnand %p719_p12, %p1133_p0  ;;  %s722_s6 = sshll.u32 %s794_s24, 4  ;;  %s723_s6 = int_to_ptr.vmem [resolvable:$false] %s722_s6 }
  0x57   : > { %v298_v40 = vrot.slane %v292_v35, 1  ;;  %v308_v43 = vrot.slane %v293_v29, 2  ;;  %v310_v44 = vrot.slane %v294_v33, 2  ;;  %v347_v46 = vrot.slane %v341_v39, 1  ;;  %s724_s7 = scalar_lea.vmem %s723_s6, 512  ;;  %p725_p9 = scmp.lt.s32.totalorder %s1080_s27, %s723_s6 }
  0x58   : > { %v302_v45 = vsel %vm211_vm0, %v299_v37, %v301_v38  ;;  %v349_v47 = vrot.slane %v342_v41, 1  ;;  %v307_v49 = vrot.slane %v292_v35, 2  ;;  %v346_v50 = vrot.slane %v340_v42, 1  ;;  %p721_p7 = pneg %p720_p2  ;;  %p726_p13 = scmp.lt.s32.totalorder %s724_s7, %s718_s22 }
  0x59   : > { %276 = vrot.lane.b32.xlu1 %v1014_v34, %s792_s19  ;;  %v300_v48 = vsel %vm211_vm0, %v298_v40, %v299_v37  ;;  %v306_v51 = vadd.f32 %v302_v45, %v293_v29  ;;  %v311_v52 = vsel %vm221_vm1, %v308_v43, %v310_v44  ;;  %v356_v55 = vrot.slane %v341_v39, 2 }
  0x5a   : > { %235 = vrot.lane.b32.xlu0 %v1020_v36, %s792_s19  ;;  %v305_v53 = vadd.f32 %v300_v48, %v292_v35  ;;  %v350_v54 = vsel %vm211_vm0, %v347_v46, %v349_v47  ;;  %v358_v56 = vrot.slane %v342_v41, 2  ;;  %v309_v57 = vsel %vm221_vm1, %v307_v49, %v308_v43  ;;  %p727_p1 = por %p726_p13, %p725_p9 }
  0x5b   : > { %v348_v58 = vsel %vm211_vm0, %v346_v50, %v347_v46  ;;  %v355_v59 = vrot.slane %v340_v42, 2  ;;  %v315_v60 = vadd.f32 %v311_v52, %v306_v51  ;;  %v354_v61 = vadd.f32 %v350_v54, %v341_v39 }
  0x5c   : > { %v389_v62 = vmul.f32 %v976_v1, %v984_v7  ;;  %v314_v63 = vadd.f32 %v309_v57, %v305_v53  ;;  %v359_v3 = vsel %vm221_vm1, %v356_v55, %v358_v56  ;;  %v353_v4 = vadd.f32 %v348_v58, %v340_v42  ;;  %p728_p3 = pnand %p727_p1, %p721_p7 }
  0x5d   : > { %243 = vrot.lane.b32.xlu1 %v1020_v36, %s793_s4  ;;  %v390_v5 = vmul.f32 %v990_v12, %v204_v17  ;;  %v357_v6 = vsel %vm221_vm1, %v355_v59, %v356_v55  ;;  %v388_v8 = vmul.f32 %v974_v0, %v978_v2  ;;  %v363_v9 = vadd.f32 %v359_v3, %v354_v61 }
  0x5e   : > { %241 = vrot.lane.b32.xlu0 %v1008_v30, %s793_s4  ;;  %v362_v1 = vadd.f32 %v357_v6, %v353_v4  ;;  %v395_v7 = vrot.slane %v389_v62, 1  ;;  %v404_v13 = vrot.slane %v389_v62, 2  ;;  %vm470_vm2 = vcmask 130048  }
  0x5f   : > { %v397_v10 = vrot.slane %v390_v5, 1  ;;  %v394_v11 = vrot.slane %v388_v8, 1  ;;  %v406_v14 = vrot.slane %v390_v5, 2  ;;  %v403_v0 = vrot.slane %v388_v8, 2 }
  0x61   : > { %284 = vrot.lane.b32.xlu1 %v1014_v34, %s793_s4  ;;  %v398_v12 = vsel %vm211_vm0, %v395_v7, %v397_v10  ;;  %v396_v15 = vsel %vm211_vm0, %v394_v11, %v395_v7  ;;  %v407_v16 = vsel %vm221_vm1, %v404_v13, %v406_v14  ;;  %v405_v18 = vsel %vm221_vm1, %v403_v0, %v404_v13 }
  0x62   : > { %282 = vrot.lane.b32.xlu0 %v1002_v26, %s793_s4  ;;  %v402_v2 = vadd.f32 %v398_v12, %v389_v62  ;;  %v401_v17 = vadd.f32 %v396_v15, %v388_v8 }
  0x64   : > { %v411_v19 = vadd.f32 %v407_v16, %v402_v2  ;;  %v410_v20 = vadd.f32 %v405_v18, %v401_v17 }
  0x65   : > { %320 = vrot.lane.b32.xlu1 %v315_v60, %s792_s19 }
  0x66   : > { %318 = vrot.lane.b32.xlu0 %v314_v63, %s792_s19 }
  0x69   : > { %368 = vrot.lane.b32.xlu1 %v363_v9, %s792_s19 }
  0x6a   : > { %366 = vrot.lane.b32.xlu0 %v362_v1, %s792_s19 }
  0x6d   : > { %328 = vrot.lane.b32.xlu1 %v315_v60, %s793_s4 }
  0x6e   : > { %326 = vrot.lane.b32.xlu0 %v314_v63, %s793_s4 }
  0x71   : > { %376 = vrot.lane.b32.xlu1 %v363_v9, %s793_s4 }
  0x72   : > { %374 = vrot.lane.b32.xlu0 %v362_v1, %s793_s4 }
  0x75   : > { %416 = vrot.lane.b32.xlu1 %v411_v19, %s792_s19 }
  0x76   : > { %414 = vrot.lane.b32.xlu0 %v410_v20, %s792_s19 }
  0x79   : > { %424 = vrot.lane.b32.xlu1 %v411_v19, %s793_s4 }
  0x7a   : > { %422 = vrot.lane.b32.xlu0 %v410_v20, %s793_s4 }
  0xc7   : > { %v275_v21 = vpop.permute.xlu1 %274 }
  0xc8   : > { %v234_v22 = vpop.permute.xlu0 %233  ;;  %v280_v35 = vadd.f32 %v275_v21, %v1002_v26 }
  0xc9   : > { %v239_v41 = vadd.f32 %v234_v22, %v1008_v30 }
  0xcb   : > { %v277_v23 = vpop.permute.xlu1 %276 }
  0xcc   : > { %v236_v24 = vpop.permute.xlu0 %235  ;;  %v281_v33 = vadd.f32 %v277_v23, %v1014_v34 }
  0xcd   : > { %v240_v38 = vadd.f32 %v236_v24, %v1020_v36 }
  0xcf   : > { %v244_v25 = vpop.permute.xlu1 %243 }
  0xd0   : > { %v242_v27 = vpop.permute.xlu0 %241  ;;  %v248_v43 = vadd.f32 %v244_v25, %v240_v38 }
  0xd1   : > { %v247_v45 = vadd.f32 %v242_v27, %v239_v41 }
  0xd2   : > { %v250_v52 = vmul.f32 0.11111111, %v248_v43 }
  0xd3   : > { %v285_v28 = vpop.permute.xlu1 %284  ;;  %v249_v53 = vmul.f32 0.11111111, %v247_v45 }
  0xd4   : > { %v283_v29 = vpop.permute.xlu0 %282  ;;  %v289_v39 = vadd.f32 %v285_v28, %v281_v33  ;;  %v337_v61 = vmul.f32 %v250_v52, %v250_v52 }
  0xd5   : > { %v288_v42 = vadd.f32 %v283_v29, %v280_v35  ;;  %v436_v33 = vmul.f32 2.0, %v249_v53 }
  0xd6   : > { %v291_v48 = vmul.f32 0.11111111, %v289_v39 }
  0xd7   : > { %v321_v31 = vpop.permute.xlu1 %320  ;;  %v290_v51 = vmul.f32 0.11111111, %v288_v42 }
  0xd8   : > { %v319_v32 = vpop.permute.xlu0 %318  ;;  %v325_v44 = vadd.f32 %v321_v31, %v315_v60  ;;  %v385_v56 = vmul.f32 %v291_v48, %v291_v48  ;;  %v433_v25 = vmul.f32 %v291_v48, %v250_v52  ;;  %v437_v31 = vmul.f32 2.0, %v250_v52 }
  0xd9   : > { %v324_v46 = vadd.f32 %v319_v32, %v314_v63  ;;  %v384_v59 = vmul.f32 %v290_v51, %v290_v51  ;;  %v336_v63 = vmul.f32 %v249_v53, %v249_v53  ;;  %v438_v38 = vmul.f32 %v436_v33, %v290_v51 }
  0xda   : > { %v449_v8 = vadd.f32 %v385_v56, %v337_v61 }
  0xdb   : > { %v369_v37 = vpop.permute.xlu1 %368  ;;  %v440_v42 = vadd.f32 0.0001, %v438_v38 }
  0xdc   : > { %v367_v40 = vpop.permute.xlu0 %366  ;;  %v373_v26 = vadd.f32 %v369_v37, %v363_v9  ;;  %v451_v0 = vadd.f32 0.0001, %v449_v8  ;;  %v439_v37 = vmul.f32 %v437_v31, %v291_v48 }
  0xdd   : > { %v372_v54 = vadd.f32 %v367_v40, %v362_v1  ;;  %v448_v1 = vadd.f32 %v384_v59, %v336_v63 }
  0xde   : > { %v441_v41 = vadd.f32 0.0001, %v439_v37 }
  0xdf   : > { %v329_v47 = vpop.permute.xlu1 %328  ;;  %v450_v18 = vadd.f32 0.0001, %v448_v1 }
  0xe0   : > { %v333_v49 = vadd.f32 %v329_v47, %v325_v44  ;;  %v327_v50 = vpop.permute.xlu0 %326 }
  0xe1   : > { %v332_v34 = vadd.f32 %v327_v50, %v324_v46 }
  0xe2   : > { %v335_v55 = vmul.f32 0.11111111, %v333_v49 }
  0xe3   : > { %v377_v36 = vpop.permute.xlu1 %376  ;;  %v334_v58 = vmul.f32 0.11111111, %v332_v34 }
  0xe4   : > { %v381_v57 = vadd.f32 %v377_v36, %v373_v26  ;;  %v375_v30 = vpop.permute.xlu0 %374  ;;  %v339_v5 = vsub.f32 %v335_v55, %v337_v61 }
  0xe5   : > { %v380_v60 = vadd.f32 %v375_v30, %v372_v54  ;;  %v338_v10 = vsub.f32 %v334_v58, %v336_v63 }
  0xe6   : > { %v383_v62 = vmul.f32 0.11111111, %v381_v57 }
  0xe7   : > { %v382_v3 = vmul.f32 0.11111111, %v380_v60  ;;  %v417_v4 = vpop.permute.xlu1 %416 }
  0xe8   : > { %v387_v6 = vsub.f32 %v383_v62, %v385_v56  ;;  %v421_v7 = vadd.f32 %v417_v4, %v411_v19  ;;  %v415_v9 = vpop.permute.xlu0 %414  ;;  %v432_v19 = vmul.f32 %v290_v51, %v249_v53 }
  0xe9   : > { %v386_v11 = vsub.f32 %v382_v3, %v384_v59  ;;  %v420_v12 = vadd.f32 %v415_v9, %v410_v20 }
  0xea   : > { %v453_v13 = vadd.f32 %v387_v6, %v339_v5 }
  0xeb   : > { %v452_v14 = vadd.f32 %v386_v11, %v338_v10  ;;  %v425_v15 = vpop.permute.xlu1 %424 }
  0xec   : > { %v455_v2 = vadd.f32 0.0009, %v453_v13  ;;  %v429_v16 = vadd.f32 %v425_v15, %v421_v7  ;;  %v423_v17 = vpop.permute.xlu0 %422 }
  0xed   : > { %v454_v21 = vadd.f32 0.0009, %v452_v14  ;;  %v428_v22 = vadd.f32 %v423_v17, %v420_v12 }
  0xee   : > { %v457_v23 = vmul.f32 %v455_v2, %v451_v0  ;;  %v431_v24 = vmul.f32 0.11111111, %v429_v16 }
  0xef   : > { %v456_v27 = vmul.f32 %v454_v21, %v450_v18  ;;  %v430_v28 = vmul.f32 0.11111111, %v428_v22 }
  0xf0   : > { %658 = vrcp.f32 %v457_v23  ;;  %v435_v29 = vsub.f32 %v431_v24, %v433_v25 }
  0xf1   : > { %660 = vrcp.f32 %v456_v27  ;;  %v434_v20 = vsub.f32 %v430_v28, %v432_v19 }
  0xf2   : > { %v443_v32 = vmul.f32 2.0, %v435_v29 }
  0xf3   : > { %v442_v35 = vmul.f32 2.0, %v434_v20 }
  0xf4   : > { %v445_v39 = vadd.f32 0.0009, %v443_v32 }
  0xf5   : > { %v444_v40 = vadd.f32 0.0009, %v442_v35 }
  0xf6   : > { %v447_v43 = vmul.f32 %v445_v39, %v441_v41 }
  0xf7   : > { %v446_v45 = vmul.f32 %v444_v40, %v440_v42 }
  0xfd   : > { %v659_v44 = vpop.eup %658 }
  0xfe   : > { %v661_v46 = vpop.eup %660  ;;  %v461_v47 = vmul.f32 %v659_v44, %v447_v43 }
  0xff   : > { %v459_v49 = vmul.f32 %v661_v46, %v446_v45 }
 0x100   : > { %v463_v50 = vsub.f32 1.0, %v461_v47 }
 0x101   : > { %v462_v34 = vsub.f32 1.0, %v459_v49 }
 0x102   : > { %v465_v52 = vmul.f32 0.5, %v463_v50 }
 0x103   : > { %v464_v26 = vmul.f32 0.5, %v462_v34 }
 0x104   : > { %v467_v48 = vmax.f32 %v465_v52, 0.0 }
 0x105   : > { %v466_v51 = vmax.f32 %v464_v26, 0.0 }
 0x106   : > { %v469_v53 = vmin.f32 %v467_v48, 1.0 }
 0x107   : > { %v468_v54 = vmin.f32 %v466_v51, 1.0 }
 0x108   : > { %472 = vst.msk [vmem:[%s201_s16 + $0x8] sm:$0xff] %vm470_vm2, %v469_v53 }
 0x109   : > { %471 = vst.msk [vmem:[%s201_s16] sm:$0xff] %vm470_vm2, %v468_v54 }
 0x10a   : > { %731 = shalt.err (!%p728_p3)
}
 0x10b   : > { %s732_s30 = scalar_lea.hbm %s1078_s26, 256  ;;  %s736_s28 = scalar_lea.hbm %s1124_s2, 1536 }
 0x10c   : > { %p733_p10 = scmp.ne.s32.totalorder %s1078_s26, %s732_s30  ;;  %p737_p5 = scmp.lt.s32.totalorder %s1078_s26, %s1124_s2 }
 0x10d   : > { %p738_p8 = scmp.lt.s32.totalorder %s736_s28, %s732_s30 }
 0x10e   : > { %p734_p11 = pnand %p733_p10, %p1133_p0 }
 0x10f   : > { %p739_p6 = por %p738_p8, %p737_p5 }
 0x110   : > { %p735_p4 = pneg %p734_p11 }
 0x112   : > { %p740_p12 = pnand %p739_p6, %p735_p4 }
 0x114   : > { %743 = shalt.err (!%p740_p12)
}
 0x115   : > { %s795_s4 = smov 128   ;;  %s796_s5 = smov 8  }
 0x116   : > { %605 = dma.vmem_to_hbm [thread:$0]  (%p1133_p0), %s1080_s27, 256, %s1078_s26, %s474_s13, %s795_s4, %s795_s4, %s796_s5  }
 0x117 PF: > { %p619_p2 = scmp.ge.s32.totalorder %s786_s12, 2  ;;  %s502_s8 = sand.u32 1, %s774_s9  }
 0x118   : > { %p1134_p7 = scmp.ne.s32.totalorder %s1129_s21, 0  ;;  %s503_s16 = scalar_lea.sflag [#allocation4], %s502_s8 }
 0x11a   : > { %p615_p9 = pnand %p619_p2, %p1134_p7 }
 0x11c   : > { %p616_p13 = pneg %p615_p9 }
 0x11e   : > { %769 = dma.done.wait (%p616_p13), %s503_s16, 256  }
 0x11f   : > { %771 = vsyncadd (%p616_p13), %s503_s16, 4294967040  ;;  %p18_p1 = scmp.ge.s32.totalorder %s837_s15, 8   ;;  %s1135_s9 = smov %s778_s10 }
 0x120   : > { %s1136_s10 = smov %s782_s11  ;;  %s1137_s11 = smov %s849_s18 }
 0x121   : > { %s1138_s12 = smov %s837_s15  ;;  %20 = sbr.rel (!%p18_p1) target bundleno = 7 (0x7), region = 86 }
 0x126   :  { %508 = vsyncpa [#allocation3], 1 }
 0x127   :  { %510 = vsyncpa [#allocation3 + $0x1], 1 }
 0x128   :  { %511 = vsyncpa [#allocation6], 1 }
 0x129   :  { %513 = vsyncpa [#allocation6 + $0x1], 1 }
 0x12a   :  { %514 = vsyncpa [#allocation4], 1 }
 0x12b   :  { %516 = vsyncpa [#allocation4 + $0x1], 1 }

</bundles_post_ra>
